<compile_context>
chip_gen: v6e
topology: v6e:2x2x1
jax: 0.10.0
libtpu: 0.0.40
codegen_flags: <defaults>
</compile_context>

<pallas_src>
import jax
import jax.numpy as jnp
from jax import lax
from jax.experimental import pallas as pl
from jax.experimental.pallas import tpu as pltpu


# Sentinel for padded points.  Must satisfy: data magnitude << SENTINEL and
# d_pad * SENTINEL^2 << f32 max (~3.4e38) so padded distances stay finite
# (no inf - inf = NaN on pad x pad corner tiles).
_SENTINEL = 1.0e15


def _round_up(x: int, m: int) -> int:
    return (x + m - 1) // m * m


def _make_kernel(tn, tm, njt, n, m, d, use_mxu):
    inv_n = 1.0 / float(n)
    inv_m = 1.0 / float(m)

    def kernel(x_ref, yt_ref, x2_ref, y2_ref, out_ref,
               col_min, row_min, row_sum):
        ii = pl.program_id(0)           # N-tile index (outer grid axis)
        jj = pl.program_id(1)           # M-tile index (inner grid axis)
        nit = pl.num_programs(0)
        njt_d = pl.num_programs(1)

        # ---- one-time init of the grid-persistent row-sum accumulator ----
        @pl.when((ii == 0) & (jj == 0))
        def _():
            row_sum[...] = jnp.zeros((1, 1), jnp.float32)

        # ---- first visit of this M-tile: init its column-min slice ----
        @pl.when(ii == 0)
        def _():
            col_min[jj] = jnp.full((1, tm), jnp.inf, jnp.float32)

        # ---- start of a new N-tile row: reset the row-min scratch ----
        @pl.when(jj == 0)
        def _():
            row_min[...] = jnp.full((tn, 1), jnp.inf, jnp.float32)

        x = x_ref[...]                  # (tn, d_pad), f32 (sentinel-padded rows)
        yt = yt_ref[...]                # (d_pad, tm), f32 (set2^T, sentinel cols)

        if use_mxu:
            # MXU path: ||x||^2 + ||y||^2 - 2 x.y, with the -2 folded into the
            # small LHS operand (O(tn*d) mul instead of an O(tn*tm) one).
            xy = jnp.dot(x * (-2.0), yt, preferred_element_type=jnp.float32)
            d2 = jnp.maximum(x2_ref[...] + (y2_ref[...] + xy), 0.0)
        else:
            # Tiny-D VPU path: direct per-coordinate difference (no
            # catastrophic cancellation for d = 1..3).
            d2 = jnp.zeros((tn, tm), jnp.float32)
            for k in range(d):
                diff = x[:, k:k + 1] - yt[k:k + 1, :]
                d2 = d2 + diff * diff

        # ---- running minima on squared distances (no masks, no sqrt yet) ----
        row_min[...] = jnp.minimum(row_min[...],
                                   jnp.min(d2, axis=1, keepdims=True))
        col_min[jj] = jnp.minimum(col_min[jj],
                                  jnp.min(d2, axis=0, keepdims=True))

        # ---- end of this N-tile row: fold sqrt(row minima) into row_sum ----
        @pl.when(jj == njt_d - 1)
        def _():
            rids = ii * tn + lax.broadcasted_iota(jnp.int32, (tn, 1), 0)
            rsq = jnp.where(rids < n, jnp.sqrt(row_min[...]), 0.0)
            row_sum[...] = row_sum[...] + jnp.sum(rsq)

        # ---- final grid step: finish both terms, write the scalar once ----
        @pl.when((ii == nit - 1) & (jj == njt_d - 1))
        def _():
            cm = col_min[...]                                   # (njt, 1, tm)
            cids = (lax.broadcasted_iota(jnp.int32, (njt, 1, tm), 0) * tm
                    + lax.broadcasted_iota(jnp.int32, (njt, 1, tm), 2))
            csq = jnp.where(cids < m, jnp.sqrt(cm), 0.0)
            out_ref[...] = row_sum[...] * inv_n + jnp.sum(csq) * inv_m

    return kernel


def avg_hausdorff_loss(set1, set2, *, max_tn=1024, max_tm=1024):
    """Averaged Hausdorff distance between two unordered point sets."""
    assert set1.ndim == 2, f"got {set1.ndim}"
    assert set2.ndim == 2, f"got {set2.ndim}"
    assert set1.shape[1] == set2.shape[1], (
        "The points in both sets must have the same number of dimensions, "
        f"got {set1.shape[1]} and {set2.shape[1]}."
    )

    n, d = set1.shape
    m, _ = set2.shape

    set1 = set1.astype(jnp.float32)
    set2 = set2.astype(jnp.float32)

    # Tile sizes: sublane-aligned N tile, lane-aligned M tile.
    # (v5e/v6e with 128 MiB VMEM comfortably take max_tm=2048; defaults are
    #  chosen so the same config also fits v7x's 64 MiB VMEM.)
    tn = _round_up(min(max_tn, _round_up(n, 8)), 8)
    tm = _round_up(min(max_tm, _round_up(m, 128)), 128)
    n_pad = _round_up(n, tn)
    m_pad = _round_up(m, tm)
    d_pad = _round_up(max(d, 1), 8)     # zero-pad D; harmless for dot / norms
    nit = n_pad // tn
    njt = m_pad // tm
    use_mxu = d >= 4                    # direct-diff only for d = 1..3

    # Sentinel-pad the extra rows of set1 / columns of set2 so their distances
    # to any real point are huge automatically (no per-tile mask in the hot
    # loop).  The D-padding columns stay zero for everyone.
    x = jnp.zeros((n_pad, d_pad), jnp.float32)
    x = x.at[:, :d].set(_SENTINEL)
    x = x.at[:n, :d].set(set1)
    yt = jnp.zeros((d_pad, m_pad), jnp.float32)
    yt = yt.at[:d, :].set(_SENTINEL)
    yt = yt.at[:d, :m].set(set2.T)

    # Squared norms, computed once in the wrapper (O((N+M)*D)), streamed as
    # tiny pipelined inputs so they are never recomputed per tile.
    x2 = jnp.sum(x * x, axis=1, keepdims=True)      # (n_pad, 1)
    y2 = jnp.sum(yt * yt, axis=0, keepdims=True)    # (1, m_pad)

    kernel = _make_kernel(tn, tm, njt, n, m, d, use_mxu)

    out = pl.pallas_call(
        kernel,
        out_shape=jax.ShapeDtypeStruct((1, 1), jnp.float32),
        grid_spec=pltpu.PrefetchScalarGridSpec(
            num_scalar_prefetch=0,
            grid=(nit, njt),            # N tiles outer, M tiles inner
            in_specs=[
                pl.BlockSpec((tn, d_pad), lambda ii, jj: (ii, 0)),   # set1 tile
                pl.BlockSpec((d_pad, tm), lambda ii, jj: (0, jj)),   # set2^T tile
                pl.BlockSpec((tn, 1), lambda ii, jj: (ii, 0)),       # ||x||^2
                pl.BlockSpec((1, tm), lambda ii, jj: (0, jj)),       # ||y||^2
            ],
            out_specs=pl.BlockSpec((1, 1), lambda ii, jj: (0, 0)),
            scratch_shapes=[
                pltpu.VMEM((njt, 1, tm), jnp.float32),  # running col minima (lane-dense)
                pltpu.VMEM((tn, 1), jnp.float32),       # per-N-tile row minima
                pltpu.VMEM((1, 1), jnp.float32),        # running sum of sqrt(row min)
            ],
        ),
        compiler_params=pltpu.CompilerParams(
            # Both grid axes carry reduction state in scratch -> "arbitrary".
            dimension_semantics=("arbitrary", "arbitrary"),
            vmem_limit_bytes=48 * 1024 * 1024,
        ),
    )(x, yt, x2, y2)
    return out[0, 0]


def _reference(set1, set2):
    diff = set1[:, None, :] - set2[None, :, :]
    dist = jnp.sqrt(jnp.sum(diff * diff, axis=-1))
    return jnp.mean(jnp.min(dist, axis=1)) + jnp.mean(jnp.min(dist, axis=0))


if __name__ == "__main__":
    key = jax.random.PRNGKey(0)
    k1, k2, k3, k4, k5, k6, k7, k8 = jax.random.split(key, 8)

    # 1) Small 2-D point sets (single tile, direct-diff VPU path).
    s1 = jax.random.uniform(k1, (64, 2), dtype=jnp.float32) * 16.0
    s2 = jax.random.uniform(k2, (48, 2), dtype=jnp.float32) * 16.0
    res = avg_hausdorff_loss(s1, s2)
    jax.block_until_ready(res)
    ref = _reference(s1, s2)
    assert jnp.allclose(res, ref, rtol=1e-5, atol=1e-5), (res, ref)

    # 2) Forced multi-tile grid (exercises sentinel padding + accumulators).
    s1 = jax.random.uniform(k3, (136, 2), dtype=jnp.float32) * 16.0
    s2 = jax.random.uniform(k4, (272, 2), dtype=jnp.float32) * 16.0
    res = avg_hausdorff_loss(s1, s2, max_tn=64, max_tm=128)
    jax.block_until_ready(res)
    ref = _reference(s1, s2)
    assert jnp.allclose(res, ref, rtol=1e-5, atol=1e-5), (res, ref)

    # 3) Higher-dimensional points (single-tile MXU path).
    s1 = jax.random.uniform(k5, (96, 16), dtype=jnp.float32)
    s2 = jax.random.uniform(k6, (80, 16), dtype=jnp.float32)
    res = avg_hausdorff_loss(s1, s2)
    jax.block_until_ready(res)
    ref = _reference(s1, s2)
    assert jnp.allclose(res, ref, rtol=1e-4, atol=1e-5), (res, ref)

    # 4) Mid-D points, multi-tile grid (MXU path + sentinel padding both axes).
    s1 = jax.random.uniform(k7, (200, 5), dtype=jnp.float32)
    s2 = jax.random.uniform(k8, (150, 5), dtype=jnp.float32)
    res = avg_hausdorff_loss(s1, s2, max_tn=64, max_tm=128)
    jax.block_until_ready(res)
    ref = _reference(s1, s2)
    assert jnp.allclose(res, ref, rtol=1e-4, atol=1e-4), (res, ref)

    print("KERNEL_OK")
</pallas_src>

<mosaic_0001>
module attributes {stable_mosaic.version = 11 : i64} {
  func.func @kernel(%arg0: i32, %arg1: i32, %arg2: memref<64x8xf32, #tpu.memory_space<vmem>>, %arg3: memref<8x128xf32, #tpu.memory_space<vmem>>, %arg4: memref<64x1xf32, #tpu.memory_space<vmem>>, %arg5: memref<1x128xf32, #tpu.memory_space<vmem>>, %arg6: memref<1x1xf32, #tpu.memory_space<vmem>>, %arg7: memref<1x1x128xf32, #tpu.memory_space<vmem>>, %arg8: memref<64x1xf32, #tpu.memory_space<vmem>>, %arg9: memref<1x1xf32, #tpu.memory_space<vmem>>) attributes {dimension_semantics = [#tpu.dimension_semantics<arbitrary>, #tpu.dimension_semantics<arbitrary>], iteration_bounds = array<i64: 1, 1>, scalar_prefetch = 0 : i64, scratch_operands = 3 : i64, tpu.core_type = #tpu.core_type<tc>, window_params = [{transform_indices = @transform_0, window_bounds = array<i64: 64, 8>}, {transform_indices = @transform_1, window_bounds = array<i64: 8, 128>}, {transform_indices = @transform_2, window_bounds = array<i64: 64, 1>}, {transform_indices = @transform_3, window_bounds = array<i64: 1, 128>}, {pipeline_mode = #tpu.pipeline_mode<synchronous>, transform_indices = @transform_4, window_bounds = array<i64: 1, 1>}]} {
    %c0_i32 = arith.constant 0 : i32
    %0 = arith.cmpi eq, %arg0, %c0_i32 : i32
    %c0_i32_0 = arith.constant 0 : i32
    %1 = arith.cmpi eq, %arg1, %c0_i32_0 : i32
    %2 = arith.andi %0, %1 : i1
    %3 = arith.extui %2 : i1 to i32
    %c0_i32_1 = arith.constant 0 : i32
    %4 = arith.cmpi ne, %3, %c0_i32_1 : i32
    scf.if %4 {
      %cst_24 = arith.constant 0.000000e+00 : f32
      %51 = vector.broadcast %cst_24 : f32 to vector<1x1xf32>
      %c0_25 = arith.constant 0 : index
      %c0_26 = arith.constant 0 : index
      %52 = vector.load %arg9[%c0_25, %c0_26] : memref<1x1xf32, #tpu.memory_space<vmem>>, vector<1x1xf32>
      tpu.vector_store %arg9[%c0_25, %c0_26], %51 {strides = array<i32>} : memref<1x1xf32, #tpu.memory_space<vmem>>, vector<1x1xf32>,
    } else {
    }
    %c0_i32_2 = arith.constant 0 : i32
    %5 = arith.cmpi eq, %arg0, %c0_i32_2 : i32
    %6 = arith.extui %5 : i1 to i32
    %c0_i32_3 = arith.constant 0 : i32
    %7 = arith.cmpi ne, %6, %c0_i32_3 : i32
    scf.if %7 {
      %cst_24 = arith.constant 0x7F800000 : f32
      %51 = vector.broadcast %cst_24 : f32 to vector<1x128xf32>
      %52 = arith.index_cast %arg1 : i32 to index
      %c0_25 = arith.constant 0 : index
      %c0_26 = arith.constant 0 : index
      %53 = vector.load %arg7[%52, %c0_25, %c0_26] : memref<1x1x128xf32, #tpu.memory_space<vmem>>, vector<1x1x128xf32>
      %54 = vector.shape_cast %53 : vector<1x1x128xf32> to vector<1x128xf32>
      %55 = vector.shape_cast %51 : vector<1x128xf32> to vector<1x1x128xf32>
      tpu.vector_store %arg7[%52, %c0_25, %c0_26], %55 {strides = array<i32>} : memref<1x1x128xf32, #tpu.memory_space<vmem>>, vector<1x1x128xf32>,
    } else {
    }
    %c0_i32_4 = arith.constant 0 : i32
    %8 = arith.cmpi eq, %arg1, %c0_i32_4 : i32
    %9 = arith.extui %8 : i1 to i32
    %c0_i32_5 = arith.constant 0 : i32
    %10 = arith.cmpi ne, %9, %c0_i32_5 : i32
    scf.if %10 {
      %cst_24 = arith.constant 0x7F800000 : f32
      %51 = vector.broadcast %cst_24 : f32 to vector<64x1xf32>
      %c0_25 = arith.constant 0 : index
      %c0_26 = arith.constant 0 : index
      %52 = vector.load %arg8[%c0_25, %c0_26] : memref<64x1xf32, #tpu.memory_space<vmem>>, vector<64x1xf32>
      tpu.vector_store %arg8[%c0_25, %c0_26], %51 {strides = array<i32>} : memref<64x1xf32, #tpu.memory_space<vmem>>, vector<64x1xf32>,
    } else {
    }
    %c0 = arith.constant 0 : index
    %c0_6 = arith.constant 0 : index
    %11 = vector.load %arg2[%c0, %c0_6] : memref<64x8xf32, #tpu.memory_space<vmem>>, vector<64x8xf32>
    %c0_7 = arith.constant 0 : index
    %c0_8 = arith.constant 0 : index
    %12 = vector.load %arg3[%c0_7, %c0_8] : memref<8x128xf32, #tpu.memory_space<vmem>>, vector<8x128xf32>
    %cst = arith.constant 0.000000e+00 : f32
    %13 = vector.broadcast %cst : f32 to vector<64x128xf32>
    %14 = vector.extract_strided_slice %11 {offsets = [0, 0], sizes = [64, 1], strides = [1, 1]} : vector<64x8xf32> to vector<64x1xf32>
    %15 = vector.extract_strided_slice %12 {offsets = [0, 0], sizes = [1, 128], strides = [1, 1]} : vector<8x128xf32> to vector<1x128xf32>
    %16 = vector.broadcast %14 : vector<64x1xf32> to vector<64x128xf32>
    %17 = vector.broadcast %15 : vector<1x128xf32> to vector<64x128xf32>
    %18 = arith.subf %16, %17 : vector<64x128xf32>
    %19 = arith.mulf %18, %18 : vector<64x128xf32>
    %20 = arith.addf %13, %19 : vector<64x128xf32>
    %21 = vector.extract_strided_slice %11 {offsets = [0, 1], sizes = [64, 1], strides = [1, 1]} : vector<64x8xf32> to vector<64x1xf32>
    %22 = vector.extract_strided_slice %12 {offsets = [1, 0], sizes = [1, 128], strides = [1, 1]} : vector<8x128xf32> to vector<1x128xf32>
    %23 = vector.broadcast %21 : vector<64x1xf32> to vector<64x128xf32>
    %24 = vector.broadcast %22 : vector<1x128xf32> to vector<64x128xf32>
    %25 = arith.subf %23, %24 : vector<64x128xf32>
    %26 = arith.mulf %25, %25 : vector<64x128xf32>
    %27 = arith.addf %20, %26 : vector<64x128xf32>
    %c0_9 = arith.constant 0 : index
    %c0_10 = arith.constant 0 : index
    %28 = vector.load %arg8[%c0_9, %c0_10] : memref<64x1xf32, #tpu.memory_space<vmem>>, vector<64x1xf32>
    %cst_11 = arith.constant dense<0x7F800000> : vector<64xf32>
    %29 = vector.multi_reduction <minimumf>, %27, %cst_11 [1] : vector<64x128xf32> to vector<64xf32>
    %30 = vector.shape_cast %29 : vector<64xf32> to vector<64x1xf32>
    %31 = arith.minimumf %28, %30 : vector<64x1xf32>
    %c0_12 = arith.constant 0 : index
    %c0_13 = arith.constant 0 : index
    %32 = vector.load %arg8[%c0_12, %c0_13] : memref<64x1xf32, #tpu.memory_space<vmem>>, vector<64x1xf32>
    tpu.vector_store %arg8[%c0_12, %c0_13], %31 {strides = array<i32>} : memref<64x1xf32, #tpu.memory_space<vmem>>, vector<64x1xf32>,
    %33 = arith.index_cast %arg1 : i32 to index
    %c0_14 = arith.constant 0 : index
    %c0_15 = arith.constant 0 : index
    %34 = vector.load %arg7[%33, %c0_14, %c0_15] : memref<1x1x128xf32, #tpu.memory_space<vmem>>, vector<1x1x128xf32>
    %35 = vector.shape_cast %34 : vector<1x1x128xf32> to vector<1x128xf32>
    %cst_16 = arith.constant dense<0x7F800000> : vector<128xf32>
    %36 = vector.multi_reduction <minimumf>, %27, %cst_16 [0] : vector<64x128xf32> to vector<128xf32>
    %37 = vector.shape_cast %36 : vector<128xf32> to vector<1x128xf32>
    %38 = arith.minimumf %35, %37 : vector<1x128xf32>
    %39 = arith.index_cast %arg1 : i32 to index
    %c0_17 = arith.constant 0 : index
    %c0_18 = arith.constant 0 : index
    %40 = vector.load %arg7[%39, %c0_17, %c0_18] : memref<1x1x128xf32, #tpu.memory_space<vmem>>, vector<1x1x128xf32>
    %41 = vector.shape_cast %40 : vector<1x1x128xf32> to vector<1x128xf32>
    %42 = vector.shape_cast %38 : vector<1x128xf32> to vector<1x1x128xf32>
    tpu.vector_store %arg7[%39, %c0_17, %c0_18], %42 {strides = array<i32>} : memref<1x1x128xf32, #tpu.memory_space<vmem>>, vector<1x1x128xf32>,
    %c0_i32_19 = arith.constant 0 : i32
    %43 = arith.cmpi eq, %arg1, %c0_i32_19 : i32
    %44 = arith.extui %43 : i1 to i32
    %c0_i32_20 = arith.constant 0 : i32
    %45 = arith.cmpi ne, %44, %c0_i32_20 : i32
    scf.if %45 {
      %c64_i32 = arith.constant 64 : i32
      %51 = arith.muli %arg0, %c64_i32 : i32
      %52 = tpu.iota {dimensions = array<i32: 0>} : vector<64x1xi32>
      %53 = vector.broadcast %51 : i32 to vector<64x1xi32>
      %54 = arith.addi %53, %52 : vector<64x1xi32>
      %c64_i32_24 = arith.constant 64 : i32
      %55 = vector.broadcast %c64_i32_24 : i32 to vector<64x1xi32>
      %56 = arith.cmpi slt, %54, %55 : vector<64x1xi32>
      %c0_25 = arith.constant 0 : index
      %c0_26 = arith.constant 0 : index
      %57 = vector.load %arg8[%c0_25, %c0_26] : memref<64x1xf32, #tpu.memory_space<vmem>>, vector<64x1xf32>
      %58 = math.sqrt %57 : vector<64x1xf32>
      %cst_27 = arith.constant 0.000000e+00 : f32
      %59 = vector.broadcast %cst_27 : f32 to vector<64x1xf32>
      %60 = arith.select %56, %58, %59 : vector<64x1xi1>, vector<64x1xf32>
      %c0_28 = arith.constant 0 : index
      %c0_29 = arith.constant 0 : index
      %61 = vector.load %arg9[%c0_28, %c0_29] : memref<1x1xf32, #tpu.memory_space<vmem>>, vector<1x1xf32>
      %62 = vector.shape_cast %60 : vector<64x1xf32> to vector<1x64x1xf32>
      %cst_30 = arith.constant dense<0.000000e+00> : vector<1xf32>
      %63 = vector.multi_reduction <add>, %62, %cst_30 [1, 2] : vector<1x64x1xf32> to vector<1xf32>
      %64 = vector.shape_cast %63 : vector<1xf32> to vector<1x1x1xf32>
      %65 = vector.extract %64[0, 0, 0] : f32 from vector<1x1x1xf32>
      %66 = vector.broadcast %65 : f32 to vector<1x1xf32>
      %67 = arith.addf %61, %66 : vector<1x1xf32>
      %c0_31 = arith.constant 0 : index
      %c0_32 = arith.constant 0 : index
      %68 = vector.load %arg9[%c0_31, %c0_32] : memref<1x1xf32, #tpu.memory_space<vmem>>, vector<1x1xf32>
      tpu.vector_store %arg9[%c0_31, %c0_32], %67 {strides = array<i32>} : memref<1x1xf32, #tpu.memory_space<vmem>>, vector<1x1xf32>,
    } else {
    }
    %c0_i32_21 = arith.constant 0 : i32
    %46 = arith.cmpi eq, %arg0, %c0_i32_21 : i32
    %c0_i32_22 = arith.constant 0 : i32
    %47 = arith.cmpi eq, %arg1, %c0_i32_22 : i32
    %48 = arith.andi %46, %47 : i1
    %49 = arith.extui %48 : i1 to i32
    %c0_i32_23 = arith.constant 0 : i32
    %50 = arith.cmpi ne, %49, %c0_i32_23 : i32
    scf.if %50 {
      %c0_24 = arith.constant 0 : index
      %c0_25 = arith.constant 0 : index
      %c0_26 = arith.constant 0 : index
      %51 = vector.load %arg7[%c0_24, %c0_25, %c0_26] : memref<1x1x128xf32, #tpu.memory_space<vmem>>, vector<1x1x128xf32>
      %52 = tpu.iota {dimensions = array<i32: 0>} : vector<1x1x128xi32>
      %c128_i32 = arith.constant 128 : i32
      %53 = vector.broadcast %c128_i32 : i32 to vector<1x1x128xi32>
      %54 = arith.muli %52, %53 : vector<1x1x128xi32>
      %55 = tpu.iota {dimensions = array<i32: 2>} : vector<1x1x128xi32>
      %56 = arith.addi %54, %55 : vector<1x1x128xi32>
      %c48_i32 = arith.constant 48 : i32
      %57 = vector.broadcast %c48_i32 : i32 to vector<1x1x128xi32>
      %58 = arith.cmpi slt, %56, %57 : vector<1x1x128xi32>
      %59 = math.sqrt %51 : vector<1x1x128xf32>
      %cst_27 = arith.constant 0.000000e+00 : f32
      %60 = vector.broadcast %cst_27 : f32 to vector<1x1x128xf32>
      %61 = arith.select %58, %59, %60 : vector<1x1x128xi1>, vector<1x1x128xf32>
      %c0_28 = arith.constant 0 : index
      %c0_29 = arith.constant 0 : index
      %62 = vector.load %arg9[%c0_28, %c0_29] : memref<1x1xf32, #tpu.memory_space<vmem>>, vector<1x1xf32>
      %cst_30 = arith.constant 1.562500e-02 : f32
      %63 = vector.broadcast %cst_30 : f32 to vector<1x1xf32>
      %64 = arith.mulf %62, %63 : vector<1x1xf32>
      %65 = vector.shape_cast %61 : vector<1x1x128xf32> to vector<1x1x1x128xf32>
      %cst_31 = arith.constant dense<0.000000e+00> : vector<1xf32>
      %66 = vector.multi_reduction <add>, %65, %cst_31 [1, 2, 3] : vector<1x1x1x128xf32> to vector<1xf32>
      %67 = vector.shape_cast %66 : vector<1xf32> to vector<1x1x1x1xf32>
      %68 = vector.extract %67[0, 0, 0, 0] : f32 from vector<1x1x1x1xf32>
      %cst_32 = arith.constant 0.020833334 : f32
      %69 = arith.mulf %68, %cst_32 : f32
      %70 = vector.broadcast %69 : f32 to vector<1x1xf32>
      %71 = arith.addf %64, %70 : vector<1x1xf32>
      %c0_33 = arith.constant 0 : index
      %c0_34 = arith.constant 0 : index
      %72 = vector.load %arg6[%c0_33, %c0_34] : memref<1x1xf32, #tpu.memory_space<vmem>>, vector<1x1xf32>
      tpu.vector_store %arg6[%c0_33, %c0_34], %71 {strides = array<i32>} : memref<1x1xf32, #tpu.memory_space<vmem>>, vector<1x1xf32>,
    } else {
    }
    return
  }
  func.func @transform_0(%arg0: i32, %arg1: i32) -> (i32, i32) {
    %c0_i32 = arith.constant 0 : i32
    %c0_i32_0 = arith.constant 0 : i32
    return %arg0, %c0_i32 : i32, i32
  }
  func.func @transform_1(%arg0: i32, %arg1: i32) -> (i32, i32) {
    %c0_i32 = arith.constant 0 : i32
    %c0_i32_0 = arith.constant 0 : i32
    return %c0_i32, %arg1 : i32, i32
  }
  func.func @transform_2(%arg0: i32, %arg1: i32) -> (i32, i32) {
    %c0_i32 = arith.constant 0 : i32
    %c0_i32_0 = arith.constant 0 : i32
    return %arg0, %c0_i32 : i32, i32
  }
  func.func @transform_3(%arg0: i32, %arg1: i32) -> (i32, i32) {
    %c0_i32 = arith.constant 0 : i32
    %c0_i32_0 = arith.constant 0 : i32
    return %c0_i32, %arg1 : i32, i32
  }
  func.func @transform_4(%arg0: i32, %arg1: i32) -> (i32, i32) {
    %c0_i32 = arith.constant 0 : i32
    %c0_i32_0 = arith.constant 0 : i32
    %c0_i32_1 = arith.constant 0 : i32
    return %c0_i32, %c0_i32_0 : i32, i32
  }
}

</mosaic_0001>

<bundles_post_ra>
// kernel: tpu_custom_call.1
= control target key start
LH: loop header
LB: loop body
LE: loop exit
PB: predicated region body
PF: predicated region fallthrough
CT: control target
= control target key end

     0   :  { %v465_v1 = vmov 1   ;;  %v466_v2 = vmov 0   ;;  %s578_s0 = inlined_call_operand.vmem [shape: f32[64,8], index: 0, kind: input, shape index: {}]   ;;  %s579_s1 = inlined_call_operand.vmem [shape: f32[8,128], index: 1, kind: input, shape index: {}]   ;;  %s580_s2 = inlined_call_operand.vmem [shape: f32[64,1], index: 2, kind: input, shape index: {}]   ;;  %s581_s3 = inlined_call_operand.vmem [shape: f32[1,128], index: 3, kind: input, shape index: {}]   ;;  %s582_s4 = inlined_call_operand.hbm [shape: f32[1,1], index: 4, kind: output, shape index: {}]  }
   0x1   :  { %v42_v0 = vld [vmem:[%s578_s0] sm:$0xff]  ;;  %423 = vset.pattern.permute.xlu1 %v465_v1  ;;  %422 = vset.pattern.permute.xlu0 %v466_v2  ;;  %v43_v3 = vld [vmem:[%s578_s0 + $0x8] sm:$0xff] }
   0x2   :  { %120 = vperm.xlu1 %423, %v42_v0   ;;  %53 = vperm.xlu0 %422, %v42_v0  }
   0x3   :  { %9 = vsyncpa [#allocation6], 0  ;;  %v44_v4 = vld [vmem:[%s578_s0 + $0x10] sm:$0xff]  ;;  %v45_v5 = vld [vmem:[%s578_s0 + $0x18] sm:$0xff]  ;;  %v467_v10 = vmov inf   ;;  %v91_v11 = vlaneseq  ;;  %vm33_vm0 = vcmask 7168  }
   0x4   :  { %v46_v6 = vld [vmem:[%s578_s0 + $0x20] sm:$0xff]  ;;  %v47_v7 = vld [vmem:[%s578_s0 + $0x28] sm:$0xff]  ;;  %v48_v8 = vld [vmem:[%s578_s0 + $0x30] sm:$0xff]  ;;  %29 = vst [vmem:[#allocation2] sm:$0x1] %v467_v10  ;;  %vm383_vm4 = vcmask 1040384  }
   0x5   :  { %v49_v9 = vld [vmem:[%s578_s0 + $0x38] sm:$0xff]  ;;  %v92_v12 = vshrl.u32 %v91_v11, 7  ;;  %v50_v15 = vld [vmem:[%s579_s1] sm:$0xff]  ;;  %34 = vst.msk [vmem:[#allocation3] sm:$0xff] %vm33_vm0, %v467_v10  ;;  %35 = vst.msk [vmem:[#allocation3 + $0x8] sm:$0xff] %vm33_vm0, %v467_v10  ;;  %s469_s6 = smov [#allocation5]  }
   0x6   :  { %124 = vperm.xlu1 %423, %v43_v3   ;;  %58 = vperm.xlu0 %422, %v43_v3   ;;  %36 = vst.msk [vmem:[#allocation3 + $0x10] sm:$0xff] %vm33_vm0, %v467_v10  ;;  %37 = vst.msk [vmem:[#allocation3 + $0x18] sm:$0xff] %vm33_vm0, %v467_v10  ;;  %s405_s7 = sshll.u32 %s469_s6, 4  ;;  %s406_s7 = int_to_ptr.vmem [resolvable:$true] %s405_s7 }
   0x7   :  { %v153_v13 = vsub.s32 1, %v92_v12  ;;  %v93_v14 = vsub.s32 0, %v92_v12  ;;  %38 = vst.msk [vmem:[#allocation3 + $0x20] sm:$0xff] %vm33_vm0, %v467_v10  ;;  %39 = vst.msk [vmem:[#allocation3 + $0x28] sm:$0xff] %vm33_vm0, %v467_v10  ;;  %s443_s8 = scalar_lea.vmem %s406_s7, 16  ;;  %s447_s9 = scalar_lea.vmem %s406_s7, 32 }
   0x8   :  { %40 = vst.msk [vmem:[#allocation3 + $0x30] sm:$0xff] %vm33_vm0, %v467_v10  ;;  %41 = vst.msk [vmem:[#allocation3 + $0x38] sm:$0xff] %vm33_vm0, %v467_v10  ;;  %p444_p0 = scmp.ne.s32.totalorder %s406_s7, %s443_s8  ;;  %p448_p1 = scmp.lt.s32.totalorder %s406_s7, %s406_s7 }
   0x9   :  { %v523_v16 = vrot.slane %v50_v15, %v153_v13  ;;  %v525_v17 = vrot.slane %v50_v15, %v93_v14  ;;  %p449_p2 = scmp.lt.s32.totalorder %s447_s9, %s443_s8 }
   0xa   :  { %128 = vperm.xlu1 %423, %v44_v4   ;;  %63 = vperm.xlu0 %422, %v44_v4  }
   0xb   :  { %p450_p3 = por %p449_p2, %p448_p1 }
   0xd   :  { %p451_p4 = pnand %p450_p3, %p444_p0 }
   0xe   :  { %132 = vperm.xlu1 %423, %v45_v5   ;;  %68 = vperm.xlu0 %422, %v45_v5  }
  0x12   :  { %136 = vperm.xlu1 %423, %v46_v6   ;;  %73 = vperm.xlu0 %422, %v46_v6  }
  0x16   :  { %140 = vperm.xlu1 %423, %v47_v7   ;;  %78 = vperm.xlu0 %422, %v47_v7  }
  0x1a   :  { %144 = vperm.xlu1 %423, %v48_v8   ;;  %83 = vperm.xlu0 %422, %v48_v8  }
  0x1e   :  { %148 = vperm.xlu1 %423, %v49_v9   ;;  %88 = vperm.xlu0 %422, %v49_v9  }
  0x22   :  { %424 = vset.pattern.permute.xlu0 %v465_v1 }
  0x7d   :  { %v121_v18 = vpop.permute.xlu1 %120  ;;  %v54_v19 = vpop.permute.xlu0 %53 }
  0x7e   :  { %v155_v20 = vsub.f32 %v121_v18, %v523_v16  ;;  %v95_v21 = vsub.f32 %v54_v19, %v525_v17 }
  0x80   :  { %v163_v22 = vmul.f32 %v155_v20, %v155_v20  ;;  %v103_v23 = vmul.f32 %v95_v21, %v95_v21 }
  0x81   :  { %v125_v24 = vpop.permute.xlu1 %124  ;;  %v59_v25 = vpop.permute.xlu0 %58 }
  0x82   :  { %v156_v26 = vsub.f32 %v125_v24, %v523_v16  ;;  %v96_v27 = vsub.f32 %v59_v25, %v525_v17  ;;  %v531_v28 = vadd.f32 %v163_v22, %v103_v23 }
  0x84   :  { %v164_v29 = vmul.f32 %v156_v26, %v156_v26  ;;  %v104_v30 = vmul.f32 %v96_v27, %v96_v27  ;;  %187 = vmin.xlane.f32.xlu0 %v531_v28  ;;  %v371_v27 = vand.u32 127, %v91_v11 }
  0x85   :  { %v129_v31 = vpop.permute.xlu1 %128  ;;  %v64_v32 = vpop.permute.xlu0 %63 }
  0x86   :  { %v157_v33 = vsub.f32 %v129_v31, %v523_v16  ;;  %v97_v34 = vsub.f32 %v64_v32, %v525_v17  ;;  %v172_v35 = vadd.f32 %v164_v29, %v104_v30  ;;  %vm372_vm1 = vcmp.lt.s32.totalorder %v371_v27, 48 }
  0x88   :  { %v165_v36 = vmul.f32 %v157_v33, %v157_v33  ;;  %v105_v37 = vmul.f32 %v97_v34, %v97_v34  ;;  %189 = vmin.xlane.f32.xlu1 %v172_v35 }
  0x89   :  { %v133_v38 = vpop.permute.xlu1 %132  ;;  %v69_v39 = vpop.permute.xlu0 %68 }
  0x8a   :  { %v158_v40 = vsub.f32 %v133_v38, %v523_v16  ;;  %v98_v41 = vsub.f32 %v69_v39, %v525_v17  ;;  %v173_v42 = vadd.f32 %v165_v36, %v105_v37  ;;  %v180_v38 = vld [vmem:[#allocation3 + $0x8] sm:$0xff] }
  0x8c   :  { %v166_v43 = vmul.f32 %v158_v40, %v158_v40  ;;  %v106_v44 = vmul.f32 %v98_v41, %v98_v41  ;;  %191 = vmin.xlane.f32.xlu0 %v173_v42  ;;  %v181_v40 = vld [vmem:[#allocation3 + $0x10] sm:$0xff] }
  0x8d   :  { %v137_v45 = vpop.permute.xlu1 %136  ;;  %v74_v46 = vpop.permute.xlu0 %73 }
  0x8e   :  { %v159_v47 = vsub.f32 %v137_v45, %v523_v16  ;;  %v99_v48 = vsub.f32 %v74_v46, %v525_v17  ;;  %v174_v49 = vadd.f32 %v166_v43, %v106_v44  ;;  %v182_v43 = vld [vmem:[#allocation3 + $0x18] sm:$0xff]  ;;  %v183_v46 = vld [vmem:[#allocation3 + $0x20] sm:$0xff] }
  0x90   :  { %v167_v50 = vmul.f32 %v159_v47, %v159_v47  ;;  %v107_v51 = vmul.f32 %v99_v48, %v99_v48  ;;  %193 = vmin.xlane.f32.xlu0 %v174_v49 }
  0x91   :  { %v141_v52 = vpop.permute.xlu1 %140  ;;  %v79_v53 = vpop.permute.xlu0 %78 }
  0x92   :  { %v160_v54 = vsub.f32 %v141_v52, %v523_v16  ;;  %v100_v55 = vsub.f32 %v79_v53, %v525_v17  ;;  %v175_v56 = vadd.f32 %v167_v50, %v107_v51  ;;  %v184_v51 = vld [vmem:[#allocation3 + $0x28] sm:$0xff] }
  0x94   :  { %v168_v57 = vmul.f32 %v160_v54, %v160_v54  ;;  %v108_v58 = vmul.f32 %v100_v55, %v100_v55  ;;  %195 = vmin.xlane.f32.xlu1 %v175_v56  ;;  %v221_v12 = vmin.f32 %v531_v28, %v175_v56  ;;  %v185_v55 = vld [vmem:[#allocation3 + $0x30] sm:$0xff] }
  0x95   :  { %v145_v59 = vpop.permute.xlu1 %144  ;;  %v84_v60 = vpop.permute.xlu0 %83 }
  0x96   :  { %v161_v61 = vsub.f32 %v145_v59, %v523_v16  ;;  %v101_v62 = vsub.f32 %v84_v60, %v525_v17  ;;  %v176_v63 = vadd.f32 %v168_v57, %v108_v58  ;;  %v186_v59 = vld [vmem:[#allocation3 + $0x38] sm:$0xff] }
  0x98   :  { %v169_v0 = vmul.f32 %v161_v61, %v161_v61  ;;  %v109_v1 = vmul.f32 %v101_v62, %v101_v62  ;;  %197 = vmin.xlane.f32.xlu0 %v176_v63  ;;  %v222_v9 = vmin.f32 %v172_v35, %v176_v63  ;;  %v179_v35 = vld [vmem:[#allocation3] sm:$0xff] }
  0x99   :  { %v149_v2 = vpop.permute.xlu1 %148  ;;  %v89_v3 = vpop.permute.xlu0 %88 }
  0x9a   :  { %v162_v4 = vsub.f32 %v149_v2, %v523_v16  ;;  %v102_v5 = vsub.f32 %v89_v3, %v525_v17  ;;  %v177_v6 = vadd.f32 %v169_v0, %v109_v1  ;;  %v225_v15 = vmin.f32 %v221_v12, %v222_v9  ;;  %v220_v17 = vld [vmem:[#allocation2] sm:$0x1] }
  0x9c   :  { %v170_v7 = vmul.f32 %v162_v4, %v162_v4  ;;  %v110_v8 = vmul.f32 %v102_v5, %v102_v5  ;;  %199 = vmin.xlane.f32.xlu1 %v177_v6  ;;  %v223_v13 = vmin.f32 %v173_v42, %v177_v6 }
  0x9e   :  { %v178_v10 = vadd.f32 %v170_v7, %v110_v8 }
  0xa0   :  { %201 = vmin.xlane.f32.xlu0 %v178_v10  ;;  %v224_v14 = vmin.f32 %v174_v49, %v178_v10 }
  0xa2   :  { %v226_v18 = vmin.f32 %v223_v13, %v224_v14 }
  0xa4   :  { %v227_v19 = vmin.f32 %v225_v15, %v226_v18 }
  0xa6   :  { %v228_v20 = vrot.slane %v227_v19, 4 }
  0xa8   :  { %v229_v21 = vmin.f32 %v227_v19, %v228_v20 }
  0xaa   :  { %v230_v22 = vrot.slane %v229_v21, 2 }
  0xac   :  { %v231_v16 = vmin.f32 %v229_v21, %v230_v22 }
  0xae   :  { %v232_v23 = vrot.slane %v231_v16, 1 }
  0xb0   :  { %v233_v24 = vmin.f32 %v231_v16, %v232_v23 }
  0xb2   :  { %v234_v25 = vmin.f32 %v220_v17, %v233_v24 }
  0xb4   :  { %235 = vst [vmem:[#allocation2] sm:$0x1] %v234_v25 }
  0xbb   :  { %v369_v26 = vld [vmem:[#allocation2] sm:$0x1] }
  0xbc   :  { %425 = vrsqrt.f32 %v369_v26  ;;  %vm375_vm2 = vcmp.eq.f32.partialorder %v369_v26, inf  ;;  %v378_v30 = vand.u32 2147483648, %v369_v26  ;;  %vm377_vm3 = vcmp.eq.f32.partialorder %v369_v26, 0.0 }
  0xc9   :  { %v426_v28 = vpop.eup %425 }
  0xca   :  { %v374_v29 = vmul.f32 %v426_v28, %v369_v26 }
  0xcc   :  { %v376_v31 = vsel %vm375_vm2, %v369_v26, %v374_v29 }
  0xcd   :  { %v379_v32 = vsel %vm377_vm3, %v378_v30, %v376_v31 }
  0xce   :  { %v380_v33 = vsel %vm372_vm1, %v379_v32, 0.0 }
  0xcf   :  { %v384_v34 = vsel %vm383_vm4, %v380_v33, 0.0 }
  0xd0   :  { %385 = vadd.xlane.f32.xlu0 %v384_v34 }
 0x10d   :  { %v188_v36 = vpop.xlane.xlu0 %187 }
 0x10e   :  { %v203_v37 = vmin.f32 %v179_v35, %v188_v36 }
 0x110   :  { %212 = vst.msk [vmem:[#allocation3] sm:$0xff] %vm33_vm0, %v203_v37 }
 0x111   :  { %v190_v39 = vpop.xlane.xlu1 %189 }
 0x112   :  { %v204_v11 = vmin.f32 %v180_v38, %v190_v39 }
 0x114   :  { %213 = vst.msk [vmem:[#allocation3 + $0x8] sm:$0xff] %vm33_vm0, %v204_v11 }
 0x115   :  { %v192_v41 = vpop.xlane.xlu0 %191 }
 0x116   :  { %v205_v42 = vmin.f32 %v181_v40, %v192_v41 }
 0x117   :  { %v266_v48 = vld [vmem:[#allocation3] sm:$0xff] }
 0x118   :  { %214 = vst.msk [vmem:[#allocation3 + $0x10] sm:$0xff] %vm33_vm0, %v205_v42  ;;  %vm276_vm6 = vcmp.eq.f32.partialorder %v266_v48, inf  ;;  %v279_v18 = vand.u32 2147483648, %v266_v48  ;;  %vm278_vm10 = vcmp.eq.f32.partialorder %v266_v48, 0.0 }
 0x119   :  { %v194_v44 = vpop.xlane.xlu0 %193 }
 0x11a   :  { %v206_v45 = vmin.f32 %v182_v43, %v194_v44 }
 0x11b   :  { %v267_v47 = vld [vmem:[#allocation3 + $0x8] sm:$0xff] }
 0x11c   :  { %215 = vst.msk [vmem:[#allocation3 + $0x18] sm:$0xff] %vm33_vm0, %v206_v45  ;;  %427 = vrsqrt.f32 %v267_v47  ;;  %vm283_vm5 = vcmp.eq.f32.partialorder %v267_v47, inf  ;;  %v286_v12 = vand.u32 2147483648, %v267_v47  ;;  %vm285_vm8 = vcmp.eq.f32.partialorder %v267_v47, 0.0 }
 0x11d   :  { %v196_v49 = vpop.xlane.xlu1 %195  ;;  %429 = vrsqrt.f32 %v266_v48 }
 0x11e   :  { %v207_v50 = vmin.f32 %v183_v46, %v196_v49 }
 0x11f   :  { %v268_v52 = vld [vmem:[#allocation3 + $0x10] sm:$0xff] }
 0x120   :  { %216 = vst.msk [vmem:[#allocation3 + $0x20] sm:$0xff] %vm33_vm0, %v207_v50  ;;  %431 = vrsqrt.f32 %v268_v52  ;;  %vm290_vm7 = vcmp.eq.f32.partialorder %v268_v52, inf  ;;  %v293_v20 = vand.u32 2147483648, %v268_v52  ;;  %vm292_vm11 = vcmp.eq.f32.partialorder %v268_v52, 0.0 }
 0x121   :  { %v198_v53 = vpop.xlane.xlu0 %197 }
 0x122   :  { %v208_v54 = vmin.f32 %v184_v51, %v198_v53 }
 0x123   :  { %v269_v56 = vld [vmem:[#allocation3 + $0x18] sm:$0xff] }
 0x124   :  { %217 = vst.msk [vmem:[#allocation3 + $0x28] sm:$0xff] %vm33_vm0, %v208_v54  ;;  %433 = vrsqrt.f32 %v269_v56  ;;  %vm297_vm9 = vcmp.eq.f32.partialorder %v269_v56, inf  ;;  %v300_v17 = vand.u32 2147483648, %v269_v56  ;;  %vm299_vm13 = vcmp.eq.f32.partialorder %v269_v56, 0.0 }
 0x125   :  { %v200_v57 = vpop.xlane.xlu1 %199 }
 0x126   :  { %v209_v58 = vmin.f32 %v185_v55, %v200_v57  ;;  %v468_v57 = vmov 0.0  }
 0x127   :  { %v270_v60 = vld [vmem:[#allocation3 + $0x20] sm:$0xff] }
 0x128   :  { %218 = vst.msk [vmem:[#allocation3 + $0x30] sm:$0xff] %vm33_vm0, %v209_v58  ;;  %435 = vrsqrt.f32 %v270_v60  ;;  %vm304_vm12 = vcmp.eq.f32.partialorder %v270_v60, inf  ;;  %v307_v28 = vand.u32 2147483648, %v270_v60  ;;  %vm306_vm14 = vcmp.eq.f32.partialorder %v270_v60, 0.0 }
 0x129   :  { %v202_v61 = vpop.xlane.xlu0 %201  ;;  %v428_v63 = vpop.eup %427 }
 0x12a   :  { %v210_v62 = vmin.f32 %v186_v59, %v202_v61  ;;  %v430_v1 = vpop.eup %429  ;;  %v282_v3 = vmul.f32 %v428_v63, %v267_v47 }
 0x12b   :  { %v271_v0 = vld [vmem:[#allocation3 + $0x28] sm:$0xff]  ;;  %v275_v5 = vmul.f32 %v430_v1, %v266_v48 }
 0x12c   :  { %219 = vst.msk [vmem:[#allocation3 + $0x38] sm:$0xff] %vm33_vm0, %v210_v62  ;;  %437 = vrsqrt.f32 %v271_v0  ;;  %v284_v8 = vsel %vm283_vm5, %v267_v47, %v282_v3  ;;  %vm311_vm15 = vcmp.eq.f32.partialorder %v271_v0, inf  ;;  %v314_v33 = vand.u32 2147483648, %v271_v0 }
 0x12d   :  { %v432_v2 = vpop.eup %431  ;;  %v277_v13 = vsel %vm276_vm6, %v266_v48, %v275_v5  ;;  %v287_v19 = vsel %vm285_vm8, %v286_v12, %v284_v8  ;;  %vm313_vm1 = vcmp.eq.f32.partialorder %v271_v0, 0.0  ;;  %vm24_vm6 = vcmask 0  }
 0x12e   :  { %v289_v6 = vmul.f32 %v432_v2, %v268_v52  ;;  %v280_v16 = vsel %vm278_vm10, %v279_v18, %v277_v13  ;;  %v340_v25 = vsel %vm33_vm0, %v287_v19, 0.0  ;;  %25 = vst.msk [vmem:[#allocation4] sm:$0x1] %vm24_vm6, %v468_v57 }
 0x12f   :  { %v272_v4 = vld [vmem:[#allocation3 + $0x30] sm:$0xff]  ;;  %v339_v30 = vsel %vm33_vm0, %v280_v16, 0.0 }
 0x130   :  { %439 = vrsqrt.f32 %v272_v4  ;;  %v291_v14 = vsel %vm290_vm7, %v268_v52, %v289_v6  ;;  %v341_v34 = vadd.f32 %v340_v25, %v339_v30  ;;  %vm318_vm2 = vcmp.eq.f32.partialorder %v272_v4, inf }
 0x131   :  { %v434_v7 = vpop.eup %433  ;;  %v294_v23 = vsel %vm292_vm11, %v293_v20, %v291_v14  ;;  %v321_v41 = vand.u32 2147483648, %v272_v4  ;;  %vm320_vm3 = vcmp.eq.f32.partialorder %v272_v4, 0.0 }
 0x132   :  { %v296_v9 = vmul.f32 %v434_v7, %v269_v56  ;;  %v342_v31 = vsel %vm33_vm0, %v294_v23, 0.0 }
 0x133   :  { %v273_v10 = vld [vmem:[#allocation3 + $0x38] sm:$0xff]  ;;  %v343_v39 = vadd.f32 %v342_v31, %v341_v34 }
 0x134   :  { %441 = vrsqrt.f32 %v273_v10  ;;  %v298_v21 = vsel %vm297_vm9, %v269_v56, %v296_v9  ;;  %vm325_vm4 = vcmp.eq.f32.partialorder %v273_v10, inf  ;;  %v328_v50 = vand.u32 2147483648, %v273_v10 }
 0x135   :  { %v436_v15 = vpop.eup %435  ;;  %v301_v27 = vsel %vm299_vm13, %v300_v17, %v298_v21  ;;  %vm327_vm5 = vcmp.eq.f32.partialorder %v273_v10, 0.0  ;;  %v338_v8 = vld [vmem:[#allocation4] sm:$0x1] }
 0x136   :  { %v303_v22 = vmul.f32 %v436_v15, %v270_v60  ;;  %v344_v36 = vsel %vm33_vm0, %v301_v27, 0.0 }
 0x137   :  { %v345_v42 = vadd.f32 %v344_v36, %v343_v39 }
 0x138   :  { %v305_v24 = vsel %vm304_vm12, %v270_v60, %v303_v22 }
 0x139   :  { %v438_v26 = vpop.eup %437  ;;  %v308_v32 = vsel %vm306_vm14, %v307_v28, %v305_v24 }
 0x13a   :  { %v310_v29 = vmul.f32 %v438_v26, %v271_v0  ;;  %v346_v40 = vsel %vm33_vm0, %v308_v32, 0.0 }
 0x13b   :  { %v347_v47 = vadd.f32 %v346_v40, %v345_v42 }
 0x13c   :  { %v312_v35 = vsel %vm311_vm15, %v271_v0, %v310_v29 }
 0x13d   :  { %v440_v37 = vpop.eup %439  ;;  %v315_v38 = vsel %vm313_vm1, %v314_v33, %v312_v35 }
 0x13e   :  { %v317_v11 = vmul.f32 %v440_v37, %v272_v4  ;;  %v348_v44 = vsel %vm33_vm0, %v315_v38, 0.0 }
 0x13f   :  { %v349_v51 = vadd.f32 %v348_v44, %v347_v47 }
 0x140   :  { %v319_v43 = vsel %vm318_vm2, %v272_v4, %v317_v11 }
 0x141   :  { %v442_v45 = vpop.eup %441  ;;  %v322_v46 = vsel %vm320_vm3, %v321_v41, %v319_v43 }
 0x142   :  { %v324_v48 = vmul.f32 %v442_v45, %v273_v10  ;;  %v350_v49 = vsel %vm33_vm0, %v322_v46, 0.0 }
 0x143   :  { %v351_v54 = vadd.f32 %v350_v49, %v349_v51 }
 0x144   :  { %v326_v52 = vsel %vm325_vm4, %v273_v10, %v324_v48 }
 0x145   :  { %v329_v53 = vsel %vm327_vm5, %v328_v50, %v326_v52 }
 0x146   :  { %v352_v55 = vsel %vm33_vm0, %v329_v53, 0.0 }
 0x147   :  { %v353_v56 = vadd.f32 %v352_v55, %v351_v54 }
 0x149   :  { %354 = vadd.xlane.f32.xlu1 %v353_v56 }
 0x159   :  { %v386_v58 = vpop.xlane.xlu0 %385 }
 0x15a   :  { %v387_v59 = vrot.slane %v386_v58, 4 }
 0x15c   :  { %v388_v60 = vadd.f32 %v387_v59, %v386_v58 }
 0x15e   :  { %v389_v61 = vrot.slane %v388_v60, 2 }
 0x160   :  { %v390_v1 = vadd.f32 %v389_v61, %v388_v60 }
 0x162   :  { %v391_v4 = vrot.slane %v390_v1, 1 }
 0x164   :  { %v392_v7 = vadd.f32 %v391_v4, %v390_v1 }
 0x1d2   :  { %v355_v62 = vpop.xlane.xlu1 %354 }
 0x1d3   :  { %v356_v63 = vrot.slane %v355_v62, 4 }
 0x1d5   :  { %v357_v0 = vadd.f32 %v356_v63, %v355_v62 }
 0x1d7   :  { %v358_v2 = vrot.slane %v357_v0, 2 }
 0x1d9   :  { %v359_v3 = vadd.f32 %v358_v2, %v357_v0 }
 0x1db   :  { %v360_v5 = vrot.slane %v359_v3, 1 }
 0x1dd   :  { %v361_v6 = vadd.f32 %v360_v5, %v359_v3 }
 0x1df   :  { %413 = vpush %v361_v6 }
 0x1e0   :  { %415 = vpush %v392_v7 }
 0x210   :  { %s414_s0 = spop %413 }
 0x211   :  { %v363_v9 = vstv %s414_s0  ;;  %s416_s1 = spop %415 }
 0x212   :  { %v364_v10 = vadd.f32 %v363_v9, %v338_v8  ;;  %s394_s5 = smul.f32 0.020833334, %s416_s1 }
 0x214   :  { %366 = vst.msk [vmem:[#allocation4] sm:$0x1] %vm24_vm6, %v364_v10  ;;  %v395_v14 = vstv %s394_s5 }
 0x21b   :  { %v381_v12 = vld [vmem:[#allocation4] sm:$0x1] }
 0x21c   :  { %v382_v13 = vmul.f32 0.015625, %v381_v12 }
 0x21e   :  { %v396_v15 = vadd.f32 %v395_v14, %v382_v13 }
 0x220   :  { %398 = vst.msk [vmem:[#allocation5] sm:$0x1] %vm24_vm6, %v396_v15 }
 0x221   :  { %454 = shalt.err (!%p451_p4)
}
 0x222   :  { %408 = dma.vmem_to_hbm [thread:$0]  %s406_s7, 16, %s582_s4, [#allocation6]  }
 0x223   :  { %463 = dma.done.wait [#allocation6], 16  }
 0x224   :  { %464 = vsyncadd [#allocation6], 4294967280 }
 0x225   :  { %412 = vsyncpa [#allocation6], 1 }

</bundles_post_ra>
